<compile_context>
chip_gen: v7x
topology: tpu7x:2x2x1
jax: 0.10.0
libtpu: 0.0.40
codegen_flags: <defaults>
</compile_context>

<pallas_src>
import jax
import jax.numpy as jnp
import numpy as np
from jax.experimental import pallas as pl
from jax.experimental.pallas import tpu as pltpu


# ------------------------------ fused kernel --------------------------------

def fused_kernel(x_ref, fc_ref, cwb_ref, o_ref):
    """pool(2x2) -> Linear(8->16) -> LeakyReLU(0.2) -> reshape -> conv1x1(pad=1)
    -> +bias -> +residual, written straight into the padded (1,2,18,18) output.

    x_ref  : (128, 18) VMEM  -- x[0], lane-padded: row = c*16+hh, lane 1+ww
                                holds x[0,c,hh,ww]; lanes 0 and 17 are zero
    fc_ref : (17, 18)  VMEM  -- rows 0..15: lane-expanded FC weight
                                (row 1+2w, lane 1+f = fc_w[f,w]; rest zero)
                                row 16: FC bias at lanes 1..16 (borders zero)
    cwb_ref: (10,)     SMEM  -- conv weights at [o*4+k], conv biases at [8+o]
    o_ref  : (1, 2, 18, 18) VMEM
    """
    # ---- 2x2 max-pool, compact rows: result row j = c*8 + h -----------------
    even = x_ref[pl.ds(0, 64, 2), :]              # spatial rows 2h   -> (64, 18)
    odd = x_ref[pl.ds(1, 64, 2), :]               # spatial rows 2h+1 -> (64, 18)
    pp = jnp.maximum(even, odd)                   # row-pair max
    # lane-pair max: pooled column w lands at index 1 + 2w of mm; the other
    # lanes hold junk that the zero rows of the FC weight matrix annihilate.
    mm = jnp.maximum(pp[:, 0:16], pp[:, 1:17])    # (64, 16)

    # ---- Linear(8->16) + bias + LeakyReLU on the MXU -------------------------
    # Output feature f lands at lane 1+f; lanes 0/17 stay exactly zero because
    # the corresponding weight columns and bias entries are zero.
    lin = jnp.dot(mm, fc_ref[0:16, :], preferred_element_type=jnp.float32)
    lin = lin + fc_ref[16:17, :]                  # FC bias (zero at borders)
    lin = jnp.where(lin >= 0.0, lin, 0.2 * lin)   # LeakyReLU(0.2); 0 stays 0

    # ---- 1x1 conv (pad=1) + bias + residual ----------------------------------
    # lin row 16*k + r is v4[k, r, :], already sitting at output lanes 1..16,
    # so every store below is a full-width store at lane offset 0.
    for o in range(2):
        acc = x_ref[pl.ds(16 * o, 16), :]         # residual x[0, o] (16, 18)
        for k in range(4):                        # 1x1 conv: sum over Cin=4
            acc = acc + cwb_ref[4 * o + k] * lin[16 * k:16 * k + 16, :]
        acc = acc + cwb_ref[8 + o]                # conv bias (also fills borders)
        o_ref[0, o, 1:17, :] = acc                # interior rows, one store
        border = jnp.full((1, 18), cwb_ref[8 + o], dtype=jnp.float32)
        o_ref[0, o, 0:1, :] = border              # top bias-only row
        o_ref[0, o, 17:18, :] = border            # bottom bias-only row


# -------------------------------- wrapper ------------------------------------

def model_forward(x, fc_w, fc_b, conv_w, conv_b):
    """x: (1, 8, 16, 16) float32 -> (1, 2, 18, 18) float32."""
    N, C, H, W = x.shape
    assert (N, C, H, W) == (1, 8, 16, 16)

    # TODO(synk): torch.nn.Dropout(0.3) (train-mode RNG) is not reproduced; treated as identity (eval).
    # Layout plumbing (weight-side pieces are constant-foldable):
    x18 = jnp.pad(x.reshape(C * H, W), ((0, 0), (1, 1)))              # (128, 18)
    w16 = jnp.zeros((16, 16), jnp.float32).at[1::2, :].set(fc_w.T)    # lane-expanded
    fc_packed = jnp.concatenate(
        [jnp.pad(w16, ((0, 0), (1, 1))),
         jnp.pad(fc_b.reshape(1, 16), ((0, 0), (1, 1)))], axis=0)     # (17, 18)
    cwb = jnp.concatenate([conv_w.reshape(8), conv_b]).astype(jnp.float32)  # (10,)

    # TODO(synk): original reshape target (1,4,28,28) and `v5 + x1` are shape-inconsistent;
    # implemented with reshape->(1,4,16,16) and residual added to the un-padded interior.
    return pl.pallas_call(
        fused_kernel,
        out_shape=jax.ShapeDtypeStruct((1, 2, 18, 18), jnp.float32),
        in_specs=[
            pl.BlockSpec(memory_space=pltpu.MemorySpace.VMEM),   # x (lane-padded)
            pl.BlockSpec(memory_space=pltpu.MemorySpace.VMEM),   # FC weight + bias
            pl.BlockSpec(memory_space=pltpu.MemorySpace.SMEM),   # conv scalars (1-D)
        ],
        out_specs=pl.BlockSpec(memory_space=pltpu.MemorySpace.VMEM),
    )(x18, fc_packed, cwb)


# ---------------------------- pure-JAX reference -----------------------------

def reference_forward(x, fc_w, fc_b, conv_w, conv_b):
    pooled = x.reshape(1, 8, 8, 2, 8, 2).max(axis=(3, 5))          # (1,8,8,8)
    lin = pooled @ fc_w.T + fc_b                                   # (1,8,8,16)
    lin = jnp.where(lin >= 0, lin, 0.2 * lin)
    v4 = lin.reshape(1, 4, 16, 16)
    v4p = jnp.pad(v4, ((0, 0), (0, 0), (1, 1), (1, 1)))
    v5 = jnp.einsum('oc,nchw->nohw', conv_w[:, :, 0, 0], v4p) + conv_b.reshape(1, 2, 1, 1)
    v6 = v5.at[:, :, 1:17, 1:17].add(x[:, :2])
    return v6


# ----------------------------------- main -------------------------------------

if __name__ == "__main__":
    key = jax.random.PRNGKey(0)
    k1, k2, k3, k4, k5 = jax.random.split(key, 5)

    x = jax.random.normal(k1, (1, 8, 16, 16), dtype=jnp.float32)
    # Deterministic synthetic parameters (shapes from the module __init__).
    fc_w = jax.random.normal(k2, (16, 8), dtype=jnp.float32) * (1.0 / np.sqrt(8.0))
    fc_b = jax.random.normal(k3, (16,), dtype=jnp.float32) * 0.1
    conv_w = jax.random.normal(k4, (2, 4, 1, 1), dtype=jnp.float32) * 0.5
    conv_b = jax.random.normal(k5, (2,), dtype=jnp.float32) * 0.1

    out = jax.jit(model_forward)(x, fc_w, fc_b, conv_w, conv_b)
    out = jax.block_until_ready(out)

    ref = reference_forward(x, fc_w, fc_b, conv_w, conv_b)
    np.testing.assert_allclose(np.asarray(out), np.asarray(ref), rtol=1e-4, atol=1e-5)

    print("KERNEL_OK")
</pallas_src>

<mosaic_0001>
module attributes {stable_mosaic.version = 11 : i64} {
  func.func @fused_kernel(%arg0: memref<128x18xf32, #tpu.memory_space<vmem>>, %arg1: memref<17x18xf32, #tpu.memory_space<vmem>>, %arg2: memref<10xf32, #tpu.memory_space<smem>>, %arg3: memref<1x2x18x18xf32, #tpu.memory_space<vmem>>) attributes {dimension_semantics = [], scalar_prefetch = 0 : i64, scratch_operands = 0 : i64, tpu.core_type = #tpu.core_type<tc>} {
    %c0 = arith.constant 0 : index
    %c0_0 = arith.constant 0 : index
    %0 = tpu.strided_load %arg0[%c0, %c0_0] {strides = array<i32: 2, 1>} : memref<128x18xf32, #tpu.memory_space<vmem>>, vector<64x18xf32>
    %c1 = arith.constant 1 : index
    %c0_1 = arith.constant 0 : index
    %1 = tpu.strided_load %arg0[%c1, %c0_1] {strides = array<i32: 2, 1>} : memref<128x18xf32, #tpu.memory_space<vmem>>, vector<64x18xf32>
    %2 = arith.maximumf %0, %1 : vector<64x18xf32>
    %3 = vector.extract_strided_slice %2 {offsets = [0, 0], sizes = [64, 16], strides = [1, 1]} : vector<64x18xf32> to vector<64x16xf32>
    %4 = vector.extract_strided_slice %2 {offsets = [0, 1], sizes = [64, 16], strides = [1, 1]} : vector<64x18xf32> to vector<64x16xf32>
    %5 = arith.maximumf %3, %4 : vector<64x16xf32>
    %c0_2 = arith.constant 0 : index
    %c0_3 = arith.constant 0 : index
    %6 = vector.load %arg1[%c0_2, %c0_3] : memref<17x18xf32, #tpu.memory_space<vmem>>, vector<16x18xf32>
    %cst = arith.constant dense<0.000000e+00> : vector<64x18xf32>
    %7 = tpu.matmul %5, %6, %cst {dimension_numbers = #tpu.dot_dimension_numbers<[1], [0], [0], [1], [0, 0, 1, 1], [], []>} : vector<64x16xf32>, vector<16x18xf32>, vector<64x18xf32> -> vector<64x18xf32>
    %c16 = arith.constant 16 : index
    %c0_4 = arith.constant 0 : index
    %8 = vector.load %arg1[%c16, %c0_4] : memref<17x18xf32, #tpu.memory_space<vmem>>, vector<1x18xf32>
    %9 = vector.broadcast %8 : vector<1x18xf32> to vector<64x18xf32>
    %10 = arith.addf %7, %9 : vector<64x18xf32>
    %cst_5 = arith.constant 0.000000e+00 : f32
    %11 = vector.broadcast %cst_5 : f32 to vector<64x18xf32>
    %12 = arith.cmpf oge, %10, %11 : vector<64x18xf32>
    %cst_6 = arith.constant 2.000000e-01 : f32
    %13 = vector.broadcast %cst_6 : f32 to vector<64x18xf32>
    %14 = arith.mulf %13, %10 : vector<64x18xf32>
    %15 = arith.select %12, %10, %14 : vector<64x18xi1>, vector<64x18xf32>
    %c0_7 = arith.constant 0 : index
    %c0_8 = arith.constant 0 : index
    %16 = vector.load %arg0[%c0_7, %c0_8] : memref<128x18xf32, #tpu.memory_space<vmem>>, vector<16x18xf32>
    %c0_9 = arith.constant 0 : index
    %17 = memref.load %arg2[%c0_9] : memref<10xf32, #tpu.memory_space<smem>>
    %18 = vector.extract_strided_slice %15 {offsets = [0, 0], sizes = [16, 18], strides = [1, 1]} : vector<64x18xf32> to vector<16x18xf32>
    %19 = vector.broadcast %17 : f32 to vector<16x18xf32>
    %20 = arith.mulf %19, %18 : vector<16x18xf32>
    %21 = arith.addf %16, %20 : vector<16x18xf32>
    %c1_10 = arith.constant 1 : index
    %22 = memref.load %arg2[%c1_10] : memref<10xf32, #tpu.memory_space<smem>>
    %23 = vector.extract_strided_slice %15 {offsets = [16, 0], sizes = [16, 18], strides = [1, 1]} : vector<64x18xf32> to vector<16x18xf32>
    %24 = vector.broadcast %22 : f32 to vector<16x18xf32>
    %25 = arith.mulf %24, %23 : vector<16x18xf32>
    %26 = arith.addf %21, %25 : vector<16x18xf32>
    %c2 = arith.constant 2 : index
    %27 = memref.load %arg2[%c2] : memref<10xf32, #tpu.memory_space<smem>>
    %28 = vector.extract_strided_slice %15 {offsets = [32, 0], sizes = [16, 18], strides = [1, 1]} : vector<64x18xf32> to vector<16x18xf32>
    %29 = vector.broadcast %27 : f32 to vector<16x18xf32>
    %30 = arith.mulf %29, %28 : vector<16x18xf32>
    %31 = arith.addf %26, %30 : vector<16x18xf32>
    %c3 = arith.constant 3 : index
    %32 = memref.load %arg2[%c3] : memref<10xf32, #tpu.memory_space<smem>>
    %33 = vector.extract_strided_slice %15 {offsets = [48, 0], sizes = [16, 18], strides = [1, 1]} : vector<64x18xf32> to vector<16x18xf32>
    %34 = vector.broadcast %32 : f32 to vector<16x18xf32>
    %35 = arith.mulf %34, %33 : vector<16x18xf32>
    %36 = arith.addf %31, %35 : vector<16x18xf32>
    %c8 = arith.constant 8 : index
    %37 = memref.load %arg2[%c8] : memref<10xf32, #tpu.memory_space<smem>>
    %38 = vector.broadcast %37 : f32 to vector<16x18xf32>
    %39 = arith.addf %36, %38 : vector<16x18xf32>
    %c0_11 = arith.constant 0 : index
    %c0_12 = arith.constant 0 : index
    %c1_13 = arith.constant 1 : index
    %c0_14 = arith.constant 0 : index
    %40 = vector.load %arg3[%c0_11, %c0_12, %c1_13, %c0_14] : memref<1x2x18x18xf32, #tpu.memory_space<vmem>>, vector<1x1x16x18xf32>
    %41 = vector.shape_cast %40 : vector<1x1x16x18xf32> to vector<16x18xf32>
    %42 = vector.shape_cast %39 : vector<16x18xf32> to vector<1x1x16x18xf32>
    tpu.vector_store %arg3[%c0_11, %c0_12, %c1_13, %c0_14], %42 {strides = array<i32>} : memref<1x2x18x18xf32, #tpu.memory_space<vmem>>, vector<1x1x16x18xf32>,
    %c8_15 = arith.constant 8 : index
    %43 = memref.load %arg2[%c8_15] : memref<10xf32, #tpu.memory_space<smem>>
    %44 = vector.broadcast %43 : f32 to vector<1x18xf32>
    %c0_16 = arith.constant 0 : index
    %c0_17 = arith.constant 0 : index
    %c0_18 = arith.constant 0 : index
    %c0_19 = arith.constant 0 : index
    %45 = vector.load %arg3[%c0_16, %c0_17, %c0_18, %c0_19] : memref<1x2x18x18xf32, #tpu.memory_space<vmem>>, vector<1x1x1x18xf32>
    %46 = vector.shape_cast %45 : vector<1x1x1x18xf32> to vector<1x18xf32>
    %47 = vector.shape_cast %44 : vector<1x18xf32> to vector<1x1x1x18xf32>
    tpu.vector_store %arg3[%c0_16, %c0_17, %c0_18, %c0_19], %47 {strides = array<i32>} : memref<1x2x18x18xf32, #tpu.memory_space<vmem>>, vector<1x1x1x18xf32>,
    %c0_20 = arith.constant 0 : index
    %c0_21 = arith.constant 0 : index
    %c17 = arith.constant 17 : index
    %c0_22 = arith.constant 0 : index
    %48 = vector.load %arg3[%c0_20, %c0_21, %c17, %c0_22] : memref<1x2x18x18xf32, #tpu.memory_space<vmem>>, vector<1x1x1x18xf32>
    %49 = vector.shape_cast %48 : vector<1x1x1x18xf32> to vector<1x18xf32>
    %50 = vector.shape_cast %44 : vector<1x18xf32> to vector<1x1x1x18xf32>
    tpu.vector_store %arg3[%c0_20, %c0_21, %c17, %c0_22], %50 {strides = array<i32>} : memref<1x2x18x18xf32, #tpu.memory_space<vmem>>, vector<1x1x1x18xf32>,
    %c16_23 = arith.constant 16 : index
    %c0_24 = arith.constant 0 : index
    %51 = vector.load %arg0[%c16_23, %c0_24] : memref<128x18xf32, #tpu.memory_space<vmem>>, vector<16x18xf32>
    %c4 = arith.constant 4 : index
    %52 = memref.load %arg2[%c4] : memref<10xf32, #tpu.memory_space<smem>>
    %53 = vector.extract_strided_slice %15 {offsets = [0, 0], sizes = [16, 18], strides = [1, 1]} : vector<64x18xf32> to vector<16x18xf32>
    %54 = vector.broadcast %52 : f32 to vector<16x18xf32>
    %55 = arith.mulf %54, %53 : vector<16x18xf32>
    %56 = arith.addf %51, %55 : vector<16x18xf32>
    %c5 = arith.constant 5 : index
    %57 = memref.load %arg2[%c5] : memref<10xf32, #tpu.memory_space<smem>>
    %58 = vector.extract_strided_slice %15 {offsets = [16, 0], sizes = [16, 18], strides = [1, 1]} : vector<64x18xf32> to vector<16x18xf32>
    %59 = vector.broadcast %57 : f32 to vector<16x18xf32>
    %60 = arith.mulf %59, %58 : vector<16x18xf32>
    %61 = arith.addf %56, %60 : vector<16x18xf32>
    %c6 = arith.constant 6 : index
    %62 = memref.load %arg2[%c6] : memref<10xf32, #tpu.memory_space<smem>>
    %63 = vector.extract_strided_slice %15 {offsets = [32, 0], sizes = [16, 18], strides = [1, 1]} : vector<64x18xf32> to vector<16x18xf32>
    %64 = vector.broadcast %62 : f32 to vector<16x18xf32>
    %65 = arith.mulf %64, %63 : vector<16x18xf32>
    %66 = arith.addf %61, %65 : vector<16x18xf32>
    %c7 = arith.constant 7 : index
    %67 = memref.load %arg2[%c7] : memref<10xf32, #tpu.memory_space<smem>>
    %68 = vector.extract_strided_slice %15 {offsets = [48, 0], sizes = [16, 18], strides = [1, 1]} : vector<64x18xf32> to vector<16x18xf32>
    %69 = vector.broadcast %67 : f32 to vector<16x18xf32>
    %70 = arith.mulf %69, %68 : vector<16x18xf32>
    %71 = arith.addf %66, %70 : vector<16x18xf32>
    %c9 = arith.constant 9 : index
    %72 = memref.load %arg2[%c9] : memref<10xf32, #tpu.memory_space<smem>>
    %73 = vector.broadcast %72 : f32 to vector<16x18xf32>
    %74 = arith.addf %71, %73 : vector<16x18xf32>
    %c0_25 = arith.constant 0 : index
    %c1_26 = arith.constant 1 : index
    %c1_27 = arith.constant 1 : index
    %c0_28 = arith.constant 0 : index
    %75 = vector.load %arg3[%c0_25, %c1_26, %c1_27, %c0_28] : memref<1x2x18x18xf32, #tpu.memory_space<vmem>>, vector<1x1x16x18xf32>
    %76 = vector.shape_cast %75 : vector<1x1x16x18xf32> to vector<16x18xf32>
    %77 = vector.shape_cast %74 : vector<16x18xf32> to vector<1x1x16x18xf32>
    tpu.vector_store %arg3[%c0_25, %c1_26, %c1_27, %c0_28], %77 {strides = array<i32>} : memref<1x2x18x18xf32, #tpu.memory_space<vmem>>, vector<1x1x16x18xf32>,
    %c9_29 = arith.constant 9 : index
    %78 = memref.load %arg2[%c9_29] : memref<10xf32, #tpu.memory_space<smem>>
    %79 = vector.broadcast %78 : f32 to vector<1x18xf32>
    %c0_30 = arith.constant 0 : index
    %c1_31 = arith.constant 1 : index
    %c0_32 = arith.constant 0 : index
    %c0_33 = arith.constant 0 : index
    %80 = vector.load %arg3[%c0_30, %c1_31, %c0_32, %c0_33] : memref<1x2x18x18xf32, #tpu.memory_space<vmem>>, vector<1x1x1x18xf32>
    %81 = vector.shape_cast %80 : vector<1x1x1x18xf32> to vector<1x18xf32>
    %82 = vector.shape_cast %79 : vector<1x18xf32> to vector<1x1x1x18xf32>
    tpu.vector_store %arg3[%c0_30, %c1_31, %c0_32, %c0_33], %82 {strides = array<i32>} : memref<1x2x18x18xf32, #tpu.memory_space<vmem>>, vector<1x1x1x18xf32>,
    %c0_34 = arith.constant 0 : index
    %c1_35 = arith.constant 1 : index
    %c17_36 = arith.constant 17 : index
    %c0_37 = arith.constant 0 : index
    %83 = vector.load %arg3[%c0_34, %c1_35, %c17_36, %c0_37] : memref<1x2x18x18xf32, #tpu.memory_space<vmem>>, vector<1x1x1x18xf32>
    %84 = vector.shape_cast %83 : vector<1x1x1x18xf32> to vector<1x18xf32>
    %85 = vector.shape_cast %79 : vector<1x18xf32> to vector<1x1x1x18xf32>
    tpu.vector_store %arg3[%c0_34, %c1_35, %c17_36, %c0_37], %85 {strides = array<i32>} : memref<1x2x18x18xf32, #tpu.memory_space<vmem>>, vector<1x1x1x18xf32>,
    return
  }
}

</mosaic_0001>

<bundles_post_ra>
// kernel: model_forward.1
= control target key start
LH: loop header
LB: loop body
LE: loop exit
PB: predicated region body
PF: predicated region fallthrough
CT: control target
= control target key end

     0   :  { %8 = vsyncpa [#allocation3], 0  ;;  %s597_s0 = inlined_call_operand.vmem [shape: f32[128,18], index: 0, kind: input, shape index: {}]   ;;  %s598_s1 = inlined_call_operand.vmem [shape: f32[17,18], index: 1, kind: input, shape index: {}]   ;;  %s599_s2 = inlined_call_operand.vmem [shape: f32[10], index: 2, kind: input, shape index: {}]   ;;  %s600_s3 = inlined_call_operand.vmem [shape: f32[1,2,18,18], index: 3, kind: output, shape index: {}]  }
   0x1   :  { %s19_s14 = sshll.u32 %s599_s2, 4  ;;  %s20_s14 = int_to_ptr.vmem [resolvable:$true] %s19_s14 }
   0x2   :  { %s420_s15 = scalar_lea.vmem %s20_s14, 16  ;;  %p425_p1 = scmp.lt.s32.totalorder %s20_s14, %s20_s14 }
   0x3   :  { %p421_p0 = scmp.ne.s32.totalorder %s20_s14, %s420_s15  ;;  %p426_p2 = scmp.lt.s32.totalorder %s420_s15, %s420_s15 }
   0x5   :  { %p427_p3 = por %p426_p2, %p425_p1 }
   0x7   :  { %p428_p4 = pnand %p427_p3, %p421_p0 }
   0x9   :  { %431 = shalt.err (!%p428_p4)
}
   0xa   :  { %s434_s16 = smov [#allocation2]  }
   0xb   :  { %22 = dma.vmem_to_smem %s20_s14, 16, %s434_s16, [#allocation3]  }
   0xc   :  { %432 = dma.done.wait [#allocation3], 16  }
   0xd   :  { %433 = vsyncadd [#allocation3], 4294967280 }
   0xe   :  { %26 = sfence }
   0xf   :  { %v348_v0 = vld [vmem:[%s597_s0 + $0x20] ss:$2 sm:$0xff]  ;;  %v356_v1 = vld [vmem:[%s597_s0 + $0x21] ss:$2 sm:$0xff]  ;;  %v347_v8 = vld [vmem:[%s597_s0 + $0x10] ss:$2 sm:$0xff] }
  0x10   :  { %v60_v2 = vmax.f32 %v348_v0, %v356_v1  ;;  %v27_v3 = vld [vmem:[%s597_s0] ss:$2 sm:$0xff]  ;;  %v354_v4 = vld [vmem:[%s597_s0 + $0x1] ss:$2 sm:$0xff]  ;;  %v355_v9 = vld [vmem:[%s597_s0 + $0x11] ss:$2 sm:$0xff] }
  0x11   :  { %v350_v5 = vld [vmem:[%s597_s0 + $0x40] ss:$2 sm:$0xff]  ;;  %v58_v6 = vmax.f32 %v27_v3, %v354_v4  ;;  %v358_v7 = vld [vmem:[%s597_s0 + $0x41] ss:$2 sm:$0xff]  ;;  %s435_s5 = smov 127   ;;  %v59_v12 = vmax.f32 %v347_v8, %v355_v9  ;;  %vm113_vm0 = vcmask 130048  }
  0x12   :  { %78 = vrot.lane.b32.xlu1 %v60_v2, %s435_s5  ;;  %v62_v10 = vmax.f32 %v350_v5, %v358_v7  ;;  %v106_v11 = vld [vmem:[%s598_s1] sm:$0xff]  ;;  %v351_v13 = vld [vmem:[%s597_s0 + $0x50] ss:$2 sm:$0xff]  ;;  %v359_v14 = vld [vmem:[%s597_s0 + $0x51] ss:$2 sm:$0xff]  ;;  %s374_s25 = sld [smem:[#allocation2 + $0x8]] }
  0x13   :  { %74 = vrot.lane.b32.xlu0 %v58_v6, %s435_s5  ;;  %v349_v15 = vld [vmem:[%s597_s0 + $0x30] ss:$2 sm:$0xff]  ;;  %v357_v16 = vld [vmem:[%s597_s0 + $0x31] ss:$2 sm:$0xff]  ;;  %v107_v17 = vld [vmem:[%s598_s1 + $0x8] sm:$0xff]  ;;  %v63_v19 = vmax.f32 %v351_v13, %v359_v14  ;;  %s380_s26 = sld [smem:[#allocation2 + $0x9]] }
  0x14   :  { %v412_v18 = vpack.c.bf16 %v107_v17, %v106_v11  ;;  %v61_v20 = vmax.f32 %v349_v15, %v357_v16  ;;  %v353_v21 = vld [vmem:[%s597_s0 + $0x70] ss:$2 sm:$0xff]  ;;  %v361_v22 = vld [vmem:[%s597_s0 + $0x71] ss:$2 sm:$0xff]  ;;  %v352_v23 = vld [vmem:[%s597_s0 + $0x60] ss:$2 sm:$0xff] }
  0x15   :  { %v360_v24 = vld [vmem:[%s597_s0 + $0x61] ss:$2 sm:$0xff]  ;;  %v65_v25 = vmax.f32 %v353_v21, %v361_v22  ;;  %vm302_vm1 = vcmask 139264   ;;  %s541_s8 = sld [smem:[#allocation2]]  ;;  %s543_s9 = sld [smem:[#allocation2 + $0x4]]  ;;  %v306_v4 = vld [vmem:[%s597_s0 + $0x18] sm:$0xff] }
  0x16   :  { %82 = vrot.lane.b32.xlu1 %v62_v10, %s435_s5  ;;  %413 = vmatprep.subr.bf16.mxu0 %v412_v18  ;;  %v64_v26 = vmax.f32 %v352_v23, %v360_v24  ;;  %s545_s10 = sld [smem:[#allocation2 + $0x1]]  ;;  %s547_s11 = sld [smem:[#allocation2 + $0x5]]  ;;  %v362_v45 = vld [vmem:[%s598_s1 + $0x10] ss:$0 sm:$0xff]  ;;  %vm297_vm10 = vcmask 146432  }
  0x17   :  { %76 = vrot.lane.b32.xlu0 %v59_v12, %s435_s5  ;;  %415 = vmatpush3.bf16.msra.mxu0 %v412_v18  ;;  %s549_s12 = sld [smem:[#allocation2 + $0x2]]  ;;  %s551_s13 = sld [smem:[#allocation2 + $0x6]] }
  0x18   :  { %416 = vmatprep.subr.bf16.mxu1 %v412_v18  ;;  %v521_v43 = vstv %s374_s25  ;;  %s556_s16 = sld [smem:[#allocation2 + $0x3]]  ;;  %s558_s17 = sld [smem:[#allocation2 + $0x7]] }
  0x19   :  { %417 = vmatpush3.bf16.msra.mxu1 %v412_v18  ;;  %v523_v44 = vstv %s380_s26  ;;  %303 = vst.msk [vmem:[%s600_s3] sm:$0x1] %vm302_vm1, %v521_v43  ;;  %304 = vst.msk [vmem:[%s600_s3 + $0x11] sm:$0x1] %vm302_vm1, %v521_v43  ;;  %v267_v18 = vld [vmem:[%s597_s0] sm:$0xff] }
  0x1a   :  { %84 = vrot.lane.b32.xlu1 %v63_v19, %s435_s5  ;;  %384 = vst.msk [vmem:[%s600_s3 + $0x18] sm:$0x1] %vm302_vm1, %v523_v44  ;;  %385 = vst.msk [vmem:[%s600_s3 + $0x29] sm:$0x1] %vm302_vm1, %v523_v44 }
  0x1b   :  { %80 = vrot.lane.b32.xlu0 %v61_v20, %s435_s5  ;;  %v270_v49 = vstv %s541_s8  ;;  %v308_v50 = vstv %s543_s9 }
  0x1c   :  { %v276_v53 = vstv %s545_s10  ;;  %v314_v54 = vstv %s547_s11 }
  0x1d   :  { %v282_v59 = vstv %s549_s12  ;;  %v320_v63 = vstv %s551_s13 }
  0x1e   :  { %88 = vrot.lane.b32.xlu1 %v65_v25, %s435_s5  ;;  %v288_v7 = vstv %s556_s16  ;;  %v326_v9 = vstv %s558_s17 }
  0x1f   :  { %86 = vrot.lane.b32.xlu0 %v64_v26, %s435_s5 }
  0x84   :  { %v79_v27 = vpop.permute.xlu1 %78 }
  0x85   :  { %v75_v28 = vpop.permute.xlu0 %74  ;;  %v100_v34 = vmax.f32 %v60_v2, %v79_v27  ;;  %v268_v2 = vld [vmem:[%s597_s0 + $0x8] sm:$0xff] }
  0x86   :  { %v98_v29 = vmax.f32 %v58_v6, %v75_v28 }
  0x88   :  { %400 = vmatprep.mubr.msk.f32.mxu0 %vm113_vm0, %v98_v29  ;;  %v83_v30 = vpop.permute.xlu1 %82 }
  0x89   :  { %v102_v31 = vmax.f32 %v62_v10, %v83_v30  ;;  %v77_v32 = vpop.permute.xlu0 %76 }
  0x8a   :  { %v99_v33 = vmax.f32 %v59_v12, %v77_v32 }
  0x8b   :  { %406 = vmatprep.mubr.msk.f32.mxu1 %vm113_vm0, %v102_v31 }
  0x8c   :  { %401 = vmatmul.mubr.msk.f32.vlgmr.msra.gmra.mrb[0].mxu0 %vm113_vm0, %v99_v33  ;;  %v85_v35 = vpop.permute.xlu1 %84 }
  0x8d   :  { %v103_v36 = vmax.f32 %v63_v19, %v85_v35  ;;  %403 = vmatprep.mubr.msk.f32.mxu0 %vm113_vm0, %v100_v34  ;;  %v81_v37 = vpop.permute.xlu0 %80  ;;  %v305_v19 = vld [vmem:[%s597_s0 + $0x10] sm:$0xff] }
  0x8e   :  { %v101_v38 = vmax.f32 %v61_v20, %v81_v37 }
  0x8f   :  { %407 = vmatmul.mubr.msk.f32.vlgmr.msra.gmra.mrb[0].mxu1 %vm113_vm0, %v103_v36 }
  0x90   :  { %404 = vmatmul.mubr.msk.f32.gmra.mrb[2].mxu0 %vm113_vm0, %v101_v38  ;;  %v89_v39 = vpop.permute.xlu1 %88 }
  0x91   :  { %v87_v40 = vpop.permute.xlu0 %86  ;;  %v105_v41 = vmax.f32 %v65_v25, %v89_v39 }
  0x92   :  { %v104_v42 = vmax.f32 %v64_v26, %v87_v40 }
  0x94   :  { %409 = vmatprep.mubr.msk.f32.mxu1 %vm113_vm0, %v104_v42 }
  0x95   :  { %410 = vmatmul.mubr.msk.f32.gmra.mrb[2].mxu1 %vm113_vm0, %v105_v41 }
 0x15f   :  { %v402_v46 = vpop.f32.mrb[0].mxu0 }
 0x160   :  { %v210_v47 = vadd.f32 %v402_v46, %v362_v45  ;;  %v204_v48 = vpop.f32.mrb[1].mxu0 }
 0x161   :  { %v205_v51 = vadd.f32 %v362_v45, %v204_v48 }
 0x162   :  { %vm244_vm2 = vcmp.ge.f32.partialorder %v210_v47, 0.0  ;;  %v252_v52 = vmul.f32 0.2, %v210_v47  ;;  %v408_v55 = vpop.f32.mrb[0].mxu1 }
 0x163   :  { %vm243_vm3 = vcmp.ge.f32.partialorder %v205_v51, 0.0  ;;  %v251_v56 = vmul.f32 0.2, %v205_v51  ;;  %v405_v57 = vpop.f32.mrb[2].mxu0  ;;  %v230_v58 = vadd.f32 %v408_v55, %v362_v45  ;;  %v224_v60 = vpop.f32.mrb[1].mxu1 }
 0x164   :  { %v260_v61 = vsel %vm244_vm2, %v210_v47, %v252_v52  ;;  %v220_v62 = vadd.f32 %v405_v57, %v362_v45  ;;  %v214_v0 = vpop.f32.mrb[3].mxu0  ;;  %v225_v1 = vadd.f32 %v362_v45, %v224_v60 }
 0x165   :  { %v272_v3 = vmul.f32 %v270_v49, %v260_v61  ;;  %v310_v5 = vmul.f32 %v308_v50, %v260_v61  ;;  %v259_v6 = vsel %vm243_vm3, %v205_v51, %v251_v56  ;;  %vm248_vm5 = vcmp.ge.f32.partialorder %v230_v58, 0.0 }
 0x166   :  { %vm246_vm4 = vcmp.ge.f32.partialorder %v220_v62, 0.0  ;;  %v254_v8 = vmul.f32 0.2, %v220_v62  ;;  %v271_v10 = vmul.f32 %v270_v49, %v259_v6  ;;  %v309_v11 = vmul.f32 %v308_v50, %v259_v6 }
 0x167   :  { %v256_v12 = vmul.f32 0.2, %v230_v58  ;;  %v215_v13 = vadd.f32 %v362_v45, %v214_v0  ;;  %v274_v14 = vadd.f32 %v272_v3, %v268_v2  ;;  %v312_v15 = vadd.f32 %v310_v5, %v306_v4 }
 0x168   :  { %v262_v16 = vsel %vm246_vm4, %v220_v62, %v254_v8  ;;  %vm247_vm6 = vcmp.ge.f32.partialorder %v225_v1, 0.0  ;;  %v411_v17 = vpop.f32.mrb[2].mxu1  ;;  %v255_v27 = vmul.f32 0.2, %v225_v1  ;;  %v273_v32 = vadd.f32 %v271_v10, %v267_v18 }
 0x169   :  { %v278_v20 = vmul.f32 %v276_v53, %v262_v16  ;;  %v316_v21 = vmul.f32 %v314_v54, %v262_v16  ;;  %v264_v22 = vsel %vm248_vm5, %v230_v58, %v256_v12  ;;  %vm245_vm7 = vcmp.ge.f32.partialorder %v215_v13, 0.0  ;;  %v234_v23 = vpop.f32.mrb[3].mxu1 }
 0x16a   :  { %v284_v24 = vmul.f32 %v282_v59, %v264_v22  ;;  %v322_v25 = vmul.f32 %v320_v63, %v264_v22  ;;  %v253_v26 = vmul.f32 0.2, %v215_v13  ;;  %v240_v30 = vadd.f32 %v411_v17, %v362_v45 }
 0x16b   :  { %v280_v28 = vadd.f32 %v278_v20, %v274_v14  ;;  %v318_v29 = vadd.f32 %v316_v21, %v312_v15  ;;  %v235_v31 = vadd.f32 %v362_v45, %v234_v23  ;;  %v311_v33 = vadd.f32 %v309_v11, %v305_v19 }
 0x16c   :  { %v261_v34 = vsel %vm245_vm7, %v215_v13, %v253_v26  ;;  %v263_v35 = vsel %vm247_vm6, %v225_v1, %v255_v27  ;;  %vm250_vm8 = vcmp.ge.f32.partialorder %v240_v30, 0.0  ;;  %v258_v42 = vmul.f32 0.2, %v240_v30 }
 0x16d   :  { %v286_v36 = vadd.f32 %v284_v24, %v280_v28  ;;  %v324_v37 = vadd.f32 %v322_v25, %v318_v29  ;;  %v277_v38 = vmul.f32 %v276_v53, %v261_v34  ;;  %v315_v39 = vmul.f32 %v314_v54, %v261_v34 }
 0x16e   :  { %v283_v40 = vmul.f32 %v282_v59, %v263_v35  ;;  %v321_v41 = vmul.f32 %v320_v63, %v263_v35  ;;  %vm249_vm9 = vcmp.ge.f32.partialorder %v235_v31, 0.0  ;;  %v257_v48 = vmul.f32 0.2, %v235_v31 }
 0x16f   :  { %v279_v46 = vadd.f32 %v277_v38, %v273_v32  ;;  %v317_v47 = vadd.f32 %v315_v39, %v311_v33  ;;  %v266_v49 = vsel %vm250_vm8, %v240_v30, %v258_v42 }
 0x170   :  { %v290_v51 = vmul.f32 %v288_v7, %v266_v49  ;;  %v328_v52 = vmul.f32 %v326_v9, %v266_v49  ;;  %v265_v55 = vsel %vm249_vm9, %v235_v31, %v257_v48 }
 0x171   :  { %v285_v50 = vadd.f32 %v283_v40, %v279_v46  ;;  %v323_v45 = vadd.f32 %v321_v41, %v317_v47  ;;  %v289_v58 = vmul.f32 %v288_v7, %v265_v55  ;;  %v327_v60 = vmul.f32 %v326_v9, %v265_v55 }
 0x172   :  { %v292_v56 = vadd.f32 %v290_v51, %v286_v36  ;;  %v330_v57 = vadd.f32 %v328_v52, %v324_v37 }
 0x173   :  { %v291_v59 = vadd.f32 %v289_v58, %v285_v50  ;;  %v329_v61 = vadd.f32 %v327_v60, %v323_v45 }
 0x174   :  { %v296_v53 = vadd.f32 %v521_v43, %v292_v56  ;;  %v334_v54 = vadd.f32 %v523_v44, %v330_v57 }
 0x175   :  { %v295_v62 = vadd.f32 %v521_v43, %v291_v59  ;;  %v333_v63 = vadd.f32 %v523_v44, %v329_v61 }
 0x176   :  { %299 = vst.msk [vmem:[%s600_s3 + $0x9] sm:$0xff] %vm297_vm10, %v296_v53  ;;  %382 = vst.msk [vmem:[%s600_s3 + $0x21] sm:$0xff] %vm297_vm10, %v334_v54 }
 0x177   :  { %298 = vst.msk [vmem:[%s600_s3 + $0x1] sm:$0xff] %vm297_vm10, %v295_v62  ;;  %381 = vst.msk [vmem:[%s600_s3 + $0x19] sm:$0xff] %vm297_vm10, %v333_v63 }
 0x178   :  { %346 = vsyncpa [#allocation3], 1 }

</bundles_post_ra>
